<compile_context>
chip_gen: v5e
topology: v5e:2x2
jax: 0.10.0
libtpu: 0.0.40
codegen_flags: <defaults>
</compile_context>

<pallas_src>
import math

import jax
import jax.numpy as jnp
from jax.experimental import pallas as pl
from jax.experimental.pallas import tpu as pltpu

# ----------------------------- problem sizes --------------------------------
VOCAB = 100
D_MODEL = 32
BATCH = 2
SEQ = 8
SCALE = math.sqrt(D_MODEL)


# ----------------------------- Pallas kernel --------------------------------
def embedding_kernel(idx_ref, tab_ref, out_ref):
    """idx_ref: (N, 1) int32, tab_ref: (V, D) f32, out_ref: (N, D) f32."""
    idx = idx_ref[...]                                   # (N, 1) int32
    n = out_ref.shape[0]
    v = tab_ref.shape[0]

    # One-hot gather on the MXU: rows of `tab` selected by `idx`.
    lane_ids = jax.lax.broadcasted_iota(jnp.int32, (n, v), 1)
    onehot = (idx == lane_ids).astype(jnp.float32)       # (N, V), exactly 0/1

    emb = jnp.dot(onehot, tab_ref[...],
                  preferred_element_type=jnp.float32)    # (N, D)
    out_ref[...] = emb * SCALE


# ------------------------------- wrapper -------------------------------------
def embedding_forward(x, table):
    """x: (B, S) int32 token ids, table: (V, D) f32 -> (B, S, D) f32."""
    B, S = x.shape
    V, D = table.shape
    n = B * S
    idx2d = x.reshape(n, 1).astype(jnp.int32)

    out = pl.pallas_call(
        embedding_kernel,
        out_shape=jax.ShapeDtypeStruct((n, D), jnp.float32),
        in_specs=[
            pl.BlockSpec(memory_space=pltpu.MemorySpace.VMEM),   # indices
            pl.BlockSpec(memory_space=pltpu.MemorySpace.VMEM),   # full table
        ],
        out_specs=pl.BlockSpec(memory_space=pltpu.MemorySpace.VMEM),
    )(idx2d, table)

    return out.reshape(B, S, D)


# --------------------------- pure-JAX reference -------------------------------
def embedding_ref(x, table):
    return jnp.take(table, x, axis=0) * SCALE


# ---------------------------------- main --------------------------------------
if __name__ == "__main__":
    key = jax.random.PRNGKey(0)
    k_idx, k_tab = jax.random.split(key)

    x = jax.random.randint(k_idx, (BATCH, SEQ), 0, VOCAB, dtype=jnp.int32)
    table = (0.1 * jax.random.normal(k_tab, (VOCAB, D_MODEL))).astype(jnp.float32)

    out = jax.block_until_ready(embedding_forward(x, table))
    ref = jax.block_until_ready(embedding_ref(x, table))

    assert out.shape == (BATCH, SEQ, D_MODEL)
    # tolerance covers possible reduced-precision MXU passes for f32 matmul
    assert jnp.allclose(out, ref, atol=1e-2, rtol=1e-2), "mismatch vs reference"
    print("KERNEL_OK")
</pallas_src>

<mosaic_0001>
module attributes {stable_mosaic.version = 11 : i64} {
  func.func @embedding_kernel(%arg0: memref<16x1xi32, #tpu.memory_space<vmem>>, %arg1: memref<100x32xf32, #tpu.memory_space<vmem>>, %arg2: memref<16x32xf32, #tpu.memory_space<vmem>>) attributes {dimension_semantics = [], scalar_prefetch = 0 : i64, scratch_operands = 0 : i64, tpu.core_type = #tpu.core_type<tc>} {
    %c0 = arith.constant 0 : index
    %c0_0 = arith.constant 0 : index
    %0 = vector.load %arg0[%c0, %c0_0] : memref<16x1xi32, #tpu.memory_space<vmem>>, vector<16x1xi32>
    %1 = tpu.iota {dimensions = array<i32: 1>} : vector<16x100xi32>
    %2 = vector.broadcast %0 : vector<16x1xi32> to vector<16x100xi32>
    %3 = arith.cmpi eq, %2, %1 : vector<16x100xi32>
    %4 = arith.extui %3 : vector<16x100xi1> to vector<16x100xi32>
    %5 = arith.sitofp %4 : vector<16x100xi32> to vector<16x100xf32>
    %c0_1 = arith.constant 0 : index
    %c0_2 = arith.constant 0 : index
    %6 = vector.load %arg1[%c0_1, %c0_2] : memref<100x32xf32, #tpu.memory_space<vmem>>, vector<100x32xf32>
    %cst = arith.constant dense<0.000000e+00> : vector<16x32xf32>
    %7 = tpu.matmul %5, %6, %cst {dimension_numbers = #tpu.dot_dimension_numbers<[1], [0], [0], [1], [0, 0, 1, 1], [], []>} : vector<16x100xf32>, vector<100x32xf32>, vector<16x32xf32> -> vector<16x32xf32>
    %cst_3 = arith.constant 5.65685415 : f32
    %8 = vector.broadcast %cst_3 : f32 to vector<16x32xf32>
    %9 = arith.mulf %7, %8 : vector<16x32xf32>
    %c0_4 = arith.constant 0 : index
    %c0_5 = arith.constant 0 : index
    %10 = vector.load %arg2[%c0_4, %c0_5] : memref<16x32xf32, #tpu.memory_space<vmem>>, vector<16x32xf32>
    tpu.vector_store %arg2[%c0_4, %c0_5], %9 {strides = array<i32>} : memref<16x32xf32, #tpu.memory_space<vmem>>, vector<16x32xf32>,
    return
  }
}

</mosaic_0001>

<bundles_post_ra>
// kernel: tpu_custom_call.1
= control target key start
LH: loop header
LB: loop body
LE: loop exit
PB: predicated region body
PF: predicated region fallthrough
CT: control target
= control target key end

     0   :  { %vm48_vm0 = vcmask 1043456   ;;  %v148_v2 = vmov 0   ;;  %s216_s0 = inlined_call_operand.vmem [shape: s32[16,1], index: 0, kind: input, shape index: {}]   ;;  %s217_s1 = inlined_call_operand.vmem [shape: f32[100,32], index: 1, kind: input, shape index: {}]   ;;  %s218_s2 = inlined_call_operand.hbm [shape: f32[16,32], index: 2, kind: output, shape index: {}]  }
   0x1   :  { %v12_v0 = vld [vmem:[%s216_s0] sm:$0xff]  ;;  %121 = vset.pattern.permute.xlu0 %v148_v2  ;;  %v39_v3 = vld [vmem:[%s217_s1 + $0x58] sm:$0xff]  ;;  %v38_v4 = vld [vmem:[%s217_s1 + $0x50] sm:$0xff] }
   0x2   :  { %v40_v1 = vld [vmem:[%s217_s1 + $0x60] sm:$0xf]  ;;  %17 = vperm.xlu0 %121, %v12_v0   ;;  %v37_v5 = vld [vmem:[%s217_s1 + $0x48] sm:$0xff] }
   0x3   :  { %100 = vmatpush.msk.msra.mxu0 %vm48_vm0, %v40_v1  ;;  %103 = vmatpush.msk.msra.mxu1 %vm48_vm0, %v40_v1 }
   0x5   :  { %56 = vmatpush.msra.mxu0 %v39_v3  ;;  %104 = vmatpush.msra.mxu1 %v39_v3 }
   0x6   :  { %7 = vsyncpa [#allocation3], 0  ;;  %v36_v6 = vld [vmem:[%s217_s1 + $0x40] sm:$0xff]  ;;  %v13_v7 = vld [vmem:[%s216_s0 + $0x8] sm:$0xff]  ;;  %v14_v16 = vlaneseq  ;;  %vm41_vm1 = vcmask 818176   ;;  %v149_v19 = vmov 0.0  }
   0x7   :  { %57 = vmatpush.msra.mxu0 %v38_v4  ;;  %105 = vmatpush.msra.mxu1 %v38_v4  ;;  %v35_v8 = vld [vmem:[%s217_s1 + $0x38] sm:$0xff]  ;;  %v34_v9 = vld [vmem:[%s217_s1 + $0x30] sm:$0xff]  ;;  %v33_v10 = vld [vmem:[%s217_s1 + $0x28] sm:$0xff]  ;;  %vm77_vm4 = vcmask 261120   ;;  %s150_s10 = smov [#allocation2]   ;;  %s86_s13 = sshll.u32 %s218_s2, 4  ;;  %s87_s13 = int_to_ptr.hbm [resolvable:$true] %s86_s13 }
   0x8   :  { %v32_v11 = vld [vmem:[%s217_s1 + $0x20] sm:$0xff]  ;;  %v31_v12 = vld [vmem:[%s217_s1 + $0x18] sm:$0xff]  ;;  %v30_v13 = vld [vmem:[%s217_s1 + $0x10] sm:$0xff]  ;;  %v15_v17 = vand.u32 127, %v14_v16  ;;  %s151_s14 = smov 128   ;;  %s152_s15 = smov 8  }
   0x9   :  { %58 = vmatpush.msra.mxu0 %v37_v5  ;;  %106 = vmatpush.msra.mxu1 %v37_v5  ;;  %v29_v14 = vld [vmem:[%s217_s1 + $0x8] sm:$0xff]  ;;  %v28_v15 = vld [vmem:[%s217_s1] sm:$0xff]  ;;  %s84_s1 = sshll.u32 %s150_s10, 4  ;;  %s85_s1 = int_to_ptr.vmem [resolvable:$true] %s84_s1 }
   0xa   :  { %20 = vperm.xlu0 %121, %v13_v7  }
   0xb   :  { %59 = vmatpush.msra.mxu0 %v36_v6  ;;  %107 = vmatpush.msra.mxu1 %v36_v6 }
   0xd   :  { %60 = vmatpush.msra.mxu0 %v35_v8  ;;  %108 = vmatpush.msra.mxu1 %v35_v8 }
   0xf   :  { %61 = vmatpush.msra.mxu0 %v34_v9  ;;  %109 = vmatpush.msra.mxu1 %v34_v9 }
  0x11   :  { %62 = vmatpush.msra.mxu0 %v33_v10  ;;  %110 = vmatpush.msra.mxu1 %v33_v10 }
  0x13   :  { %63 = vmatpush.msra.mxu0 %v32_v11  ;;  %111 = vmatpush.msra.mxu1 %v32_v11 }
  0x15   :  { %64 = vmatpush.msra.mxu0 %v31_v12  ;;  %112 = vmatpush.msra.mxu1 %v31_v12 }
  0x17   :  { %65 = vmatpush.msra.mxu0 %v30_v13  ;;  %113 = vmatpush.msra.mxu1 %v30_v13 }
  0x19   :  { %66 = vmatpush.msra.mxu0 %v29_v14  ;;  %114 = vmatpush.msra.mxu1 %v29_v14 }
  0x1b   :  { %67 = vmatpush.msra.mxu0 %v28_v15  ;;  %115 = vmatpush.msra.mxu1 %v28_v15 }
  0x74   :  { %v18_v18 = vpop.permute.xlu0 %17 }
  0x75   :  { %vm22_vm2 = vcmp.eq.s32.totalorder %v18_v18, %v15_v17 }
  0x76   :  { %v98_v20 = vsel %vm22_vm2, 1.0, %v149_v19 }
  0x77   :  { %101 = vmatmul.msk.f32.vlgmr.msra.gmra.mxu0 %vm41_vm1, %v98_v20 }
  0x7c   :  { %v21_v21 = vpop.permute.xlu0 %20 }
  0x7d   :  { %vm23_vm3 = vcmp.eq.s32.totalorder %v21_v21, %v15_v17 }
  0x7e   :  { %v99_v22 = vsel %vm23_vm3, 1.0, %v149_v19 }
  0x7f   :  { %102 = vmatmul.msk.f32.vlgmr.msra.gmra.mxu1 %vm41_vm1, %v99_v22 }
  0xf4   :  { %v69_v23 = vpop.f32.mrf.mxu0 }
  0xf5   :  { %v75_v24 = vmul.f32 5.656854, %v69_v23 }
  0xf7   :  { %78 = vst.msk [vmem:[#allocation2] sm:$0xff] %vm77_vm4, %v75_v24 }
  0xfc   :  { %v72_v25 = vpop.f32.mrf.mxu1 }
  0xfd   :  { %v76_v26 = vmul.f32 5.656854, %v72_v25 }
  0xff   :  { %79 = vst.msk [vmem:[#allocation2 + $0x8] sm:$0xff] %vm77_vm4, %v76_v26 }
 0x100   :  { %92 = dma.vmem_to_hbm [thread:$0]  %s85_s1, 256, %s87_s13, [#allocation3], %s151_s14, %s151_s14, %s152_s15  }
 0x101   :  { %146 = dma.done.wait [#allocation3], 256  }
 0x102   :  { %147 = vsyncadd [#allocation3], 4294967040 }
 0x103   :  { %97 = vsyncpa [#allocation3], 1 }

</bundles_post_ra>
